<compile_context>
chip_gen: v6e
topology: v6e:2x2x1
jax: 0.10.0
libtpu: 0.0.40
codegen_flags: <defaults>
</compile_context>

<pallas_src>
import jax
import jax.numpy as jnp
from jax.experimental import pallas as pl
from jax.experimental.pallas import tpu as pltpu


def _copy_kernel(x_ref, o_ref):
    # Input and output tiles cover the same element range: plain copy.
    o_ref[...] = x_ref[...]


def _slice_kernel(x_ref, o_ref):
    # Fallback for short sequences: input tile carries the full length L,
    # output tile the chomped length L_out; copy the leading lanes.
    l_out = o_ref.shape[-1]
    o_ref[...] = x_ref[:, :l_out]


def _sublane_multiple(dtype) -> int:
    # 8 sublanes per 32-bit vreg row; sub-32-bit dtypes pack along sublanes
    # (bf16 -> 16, int8/fp8 -> 32).
    itemsize = jnp.dtype(dtype).itemsize
    return 8 * max(1, 4 // itemsize)


_TARGET_BLOCK_BYTES = 2 * 1024 * 1024  # ~2 MiB/block: 4x buffering stays <= 8 MiB
_MAX_LANE_TILE = 2048                  # lanes (multiple of 128)


def chomp1d(x: jax.Array, chomp_size: int) -> jax.Array:
    """Drop the trailing `chomp_size` elements along the last axis of (N, C, L)."""
    assert chomp_size > 0, "chomp_size must be positive (matches x[:, :, :-s])"
    n, c, l = x.shape
    l_out = l - chomp_size
    assert l_out > 0, "chomp_size must be smaller than the sequence length"

    itemsize = jnp.dtype(x.dtype).itemsize

    # Flatten to (rows, length) so sublanes are dense regardless of C.
    r = n * c
    x2 = x.reshape(r, l)

    sub = _sublane_multiple(x.dtype)

    # Pure-memory cost hint for XLA's scheduler (read + write of the output).
    cost = pl.CostEstimate(
        flops=0,
        transcendentals=0,
        bytes_accessed=2 * r * l_out * itemsize,
    )

    if l_out >= 128:
        # ---- Lane-aligned, byte-budgeted tiled copy (hot path) ----
        # Lane tile: largest 128-multiple <= l_out, capped at _MAX_LANE_TILE.
        tl = min(_MAX_LANE_TILE, 128 * (l_out // 128))
        # Row tile: fill the byte budget, rounded down to the sublane multiple.
        tr_budget = (_TARGET_BLOCK_BYTES // (tl * itemsize)) // sub * sub
        tr_budget = max(sub, tr_budget)
        tr = r if r <= tr_budget else tr_budget  # full extent is always legal

        grid = (pl.cdiv(r, tr), pl.cdiv(l_out, tl))
        out = pl.pallas_call(
            _copy_kernel,
            out_shape=jax.ShapeDtypeStruct((r, l_out), x.dtype),
            grid_spec=pltpu.PrefetchScalarGridSpec(
                num_scalar_prefetch=0,
                grid=grid,
                # Identical index maps: input block offsets == output block
                # offsets, so the copy is unmasked in the interior. On the
                # last lane tile the input block may read into the chomped
                # tail / array padding; the matching output lanes beyond
                # l_out are masked by Pallas at the array edge (tested below
                # with l_out not a multiple of tl).
                in_specs=[pl.BlockSpec((tr, tl), lambda i, j: (i, j))],
                out_specs=pl.BlockSpec((tr, tl), lambda i, j: (i, j)),
            ),
            compiler_params=pltpu.CompilerParams(
                dimension_semantics=("parallel", "parallel"),
            ),
            cost_estimate=cost,
        )(x2)
    else:
        # ---- Short-sequence fallback (l_out < 128): tiny data, masked
        # stores acceptable. One full-length block per row tile. ----
        tr = r if r <= 512 else 512 - (512 % sub)
        grid = (pl.cdiv(r, tr),)
        out = pl.pallas_call(
            _slice_kernel,
            out_shape=jax.ShapeDtypeStruct((r, l_out), x.dtype),
            grid_spec=pltpu.PrefetchScalarGridSpec(
                num_scalar_prefetch=0,
                grid=grid,
                in_specs=[pl.BlockSpec((tr, l), lambda i: (i, 0))],
                out_specs=pl.BlockSpec((tr, l_out), lambda i: (i, 0)),
            ),
            compiler_params=pltpu.CompilerParams(
                dimension_semantics=("parallel",),
            ),
            cost_estimate=cost,
        )(x2)

    return out.reshape(n, c, l_out)


if __name__ == "__main__":
    key = jax.random.PRNGKey(0)
    k_small, k_aligned, k_ragged = jax.random.split(key, 3)

    batch, channels, chomp_size = 2, 4, 3  # chomp_size ~ (k-1)*dilation in a TCN

    # 1) Small TCN-like shape: exercises the short-sequence fallback path.
    length = 16
    x_small = jax.random.normal(k_small, (batch, channels, length), dtype=jnp.float32)
    y_small = jax.block_until_ready(chomp1d(x_small, chomp_size))
    assert y_small.shape == (batch, channels, length - chomp_size)
    assert jnp.array_equal(y_small, x_small[:, :, :-chomp_size])

    # 2) Lane-aligned path, l_out an exact multiple of the lane tile.
    length_aligned = 259  # l_out = 256
    x_aligned = jax.random.normal(
        k_aligned, (batch, channels, length_aligned), dtype=jnp.float32)
    y_aligned = jax.block_until_ready(chomp1d(x_aligned, chomp_size))
    assert y_aligned.shape == (batch, channels, length_aligned - chomp_size)
    assert jnp.array_equal(y_aligned, x_aligned[:, :, :-chomp_size])

    # 3) Lane-aligned path with a PARTIAL last lane tile (l_out = 197, tl = 128):
    #    verifies the edge-masking behaviour the hot path relies on.
    length_ragged = 200
    x_ragged = jax.random.normal(
        k_ragged, (batch, channels, length_ragged), dtype=jnp.float32)
    y_ragged = jax.block_until_ready(chomp1d(x_ragged, chomp_size))
    assert y_ragged.shape == (batch, channels, length_ragged - chomp_size)
    assert jnp.array_equal(y_ragged, x_ragged[:, :, :-chomp_size])

    print("KERNEL_OK")
</pallas_src>

<mosaic_0001>
module attributes {stable_mosaic.version = 11 : i64} {
  func.func @_slice_kernel(%arg0: i32, %arg1: memref<8x16xf32, #tpu.memory_space<vmem>>, %arg2: memref<8x13xf32, #tpu.memory_space<vmem>>) attributes {dimension_semantics = [#tpu.dimension_semantics<parallel>], iteration_bounds = array<i64: 1>, scalar_prefetch = 0 : i64, scratch_operands = 0 : i64, tpu.core_type = #tpu.core_type<tc>, window_params = [{transform_indices = @transform_0, window_bounds = array<i64: 8, 16>}, {transform_indices = @transform_1, window_bounds = array<i64: 8, 13>}]} {
    %c0 = arith.constant 0 : index
    %c0_0 = arith.constant 0 : index
    %0 = vector.load %arg1[%c0, %c0_0] : memref<8x16xf32, #tpu.memory_space<vmem>>, vector<8x13xf32>
    %c0_1 = arith.constant 0 : index
    %c0_2 = arith.constant 0 : index
    %1 = vector.load %arg2[%c0_1, %c0_2] : memref<8x13xf32, #tpu.memory_space<vmem>>, vector<8x13xf32>
    tpu.vector_store %arg2[%c0_1, %c0_2], %0 {strides = array<i32>} : memref<8x13xf32, #tpu.memory_space<vmem>>, vector<8x13xf32>,
    return
  }
  func.func @transform_0(%arg0: i32) -> (i32, i32) {
    %c0_i32 = arith.constant 0 : i32
    %c0_i32_0 = arith.constant 0 : i32
    return %arg0, %c0_i32 : i32, i32
  }
  func.func @transform_1(%arg0: i32) -> (i32, i32) {
    %c0_i32 = arith.constant 0 : i32
    %c0_i32_0 = arith.constant 0 : i32
    return %arg0, %c0_i32 : i32, i32
  }
}

</mosaic_0001>

<bundles_post_ra>
// kernel: tpu_custom_call.1
= control target key start
LH: loop header
LB: loop body
LE: loop exit
PB: predicated region body
PF: predicated region fallthrough
CT: control target
= control target key end

     0   :  { %6 = vsyncpa [#allocation3], 0  ;;  %s103_s0 = inlined_call_operand.hbm [shape: f32[8,16], index: 0, kind: input, shape index: {}]   ;;  %s104_s1 = inlined_call_operand.hbm [shape: f32[8,13], index: 1, kind: output, shape index: {}]  }
   0x1   :  { %7 = vsyncpa [#allocation4], 0  ;;  %s85_s6 = smov [#allocation2]  }
   0x2   :  { %s14_s7 = sshll.u32 %s85_s6, 4  ;;  %s15_s7 = int_to_ptr.vmem [resolvable:$true] %s14_s7 }
   0x3   :  { %s49_s8 = scalar_lea.vmem %s15_s7, 128  ;;  %p54_p1 = scmp.lt.s32.totalorder %s15_s7, %s15_s7 }
   0x4   :  { %p50_p0 = scmp.ne.s32.totalorder %s15_s7, %s49_s8  ;;  %p55_p2 = scmp.lt.s32.totalorder %s49_s8, %s49_s8 }
   0x6   :  { %p56_p3 = por %p55_p2, %p54_p1 }
   0x8   :  { %p57_p4 = pnand %p56_p3, %p50_p0 }
   0xa   :  { %60 = shalt.err (!%p57_p4)
}
   0xb   :  { %17 = dma.hbm_to_vmem [thread:$0]  %s103_s0, 128, %s15_s7, [#allocation3]  }
   0xc   :  { %81 = dma.done.wait [#allocation3], 128  }
   0xd   :  { %82 = vsyncadd [#allocation3], 4294967168  ;;  %s86_s11 = smov [#allocation5]   ;;  %vm22_vm0 = vcmask 105472   ;;  %v21_v0 = vld [vmem:[#allocation2] sm:$0xff] }
   0xe   :  { %s30_s12 = sshll.u32 %s86_s11, 4  ;;  %23 = vst.msk [vmem:[#allocation5] sm:$0xff] %vm22_vm0, %v21_v0  ;;  %s31_s12 = int_to_ptr.vmem [resolvable:$true] %s30_s12 }
   0xf   :  { %s61_s13 = scalar_lea.vmem %s31_s12, 128  ;;  %p66_p6 = scmp.lt.s32.totalorder %s31_s12, %s31_s12 }
  0x10   :  { %p62_p5 = scmp.ne.s32.totalorder %s31_s12, %s61_s13  ;;  %p67_p7 = scmp.lt.s32.totalorder %s61_s13, %s61_s13 }
  0x12   :  { %p68_p8 = por %p67_p7, %p66_p6 }
  0x14   :  { %p69_p9 = pnand %p68_p8, %p62_p5 }
  0x16   :  { %72 = shalt.err (!%p69_p9)
}
  0x17   :  { %33 = dma.vmem_to_hbm [thread:$0]  %s31_s12, 128, %s104_s1, [#allocation4]  }
  0x18   :  { %83 = dma.done.wait [#allocation4], 128  }
  0x19   :  { %84 = vsyncadd [#allocation4], 4294967168 }
  0x1a   :  { %37 = vsyncpa [#allocation3], 1 }
  0x1b   :  { %38 = vsyncpa [#allocation4], 1 }

</bundles_post_ra>
